<compile_context>
chip_gen: v6e
topology: v6e:2x2x1
jax: 0.10.0
libtpu: 0.0.40
codegen_flags: <defaults>
</compile_context>

<pallas_src>
import functools

import numpy as np
import jax
import jax.numpy as jnp
from jax.experimental import pallas as pl
from jax.experimental.pallas import tpu as pltpu

LANE = 128
SUBLANE = 8


def _round_up(x, m):
    return (x + m - 1) // m * m


def _mxu_align():
    """256-lane padding for the 256x256 MXUs on v6e/v7x, 128 elsewhere (v5e and older)."""
    try:
        kind = jax.devices()[0].device_kind.lower()
    except Exception:
        return LANE
    if any(tag in kind for tag in ("v6", "v7", "7x", "trillium")):
        return 256
    return LANE


def _vmem_limit_bytes(bb, t_tile, du_pad, d_fused, d_pad, c_pad):
    feat = 2 * bb * t_tile * du_pad * 2            # double-buffered bf16 feature tiles
    weights = du_pad * d_fused * 2 + d_fused * 4 + d_pad * c_pad * 2 + c_pad * 4
    out = 2 * bb * c_pad * 4
    scratch = bb * (LANE + d_fused) * 4
    live = 2 * bb * t_tile * d_fused * 4           # xs / p / wx intermediates
    need = feat + weights + out + scratch + live
    # generous headroom, but stay well under v7x's 64 MiB physical VMEM
    return int(min(max(2 * need, 32 << 20), 48 << 20))


def _expert_kernel(len_ref, feat_ref, wcf_ref, bcf_ref, wh_ref, bh_ref,
                   logits_ref, m_sc, acc_sc, *, bb, t_tile, d_pad, ones_col):
    """Grid = (num_batch_blocks, num_time_blocks); time is the (serial) reduction axis."""
    bi = pl.program_id(0)
    t = pl.program_id(1)
    rows = bb * t_tile

    @pl.when(t == 0)
    def _init():
        m_sc[...] = jnp.full(m_sc.shape, -jnp.inf, jnp.float32)
        acc_sc[...] = jnp.zeros(acc_sc.shape, jnp.float32)

    # Fused connector: one bf16 MXU pass produces [x | score | 1 | 0...] per frame.
    feats = feat_ref[...]                                    # (bb, t_tile, du_pad) bf16
    feats2 = feats.reshape(rows, feats.shape[-1])
    xs = jnp.dot(feats2, wcf_ref[...],
                 preferred_element_type=jnp.float32) + bcf_ref[...]   # (rows, d_fused) f32
    d_fused = xs.shape[-1]
    xs3 = xs.reshape(bb, t_tile, d_fused)

    # Additive padding mask rebuilt in-kernel from per-sample int32 lengths (SMEM).
    b0 = bi * bb
    row_ids = jax.lax.broadcasted_iota(jnp.int32, (bb, 1, LANE), 0)
    len_b = jnp.zeros((bb, 1, LANE), jnp.int32)
    for j in range(bb):                                      # bb is small and static
        len_b = jnp.where(row_ids == j, len_ref[b0 + j], len_b)
    frame = t * t_tile + jax.lax.broadcasted_iota(jnp.int32, (bb, t_tile, LANE), 1)
    s = xs3[:, :, d_pad:d_pad + LANE] + jnp.where(frame < len_b, 0.0, -100000.0)

    # Online (flash-style) masked softmax over time; the SAP score lives in lane 0.
    m_prev = m_sc[...]                                       # (bb, LANE)
    m_new = jnp.maximum(m_prev, jnp.max(s, axis=1))          # (bb, LANE)
    alpha = jnp.exp(m_prev[:, :1] - m_new[:, :1])            # (bb, 1)
    p = jnp.exp(s - m_new[:, None, :])                       # (bb, t_tile, LANE)

    # Attention-weighted time reduction on the MXU: scale frames by their softmax
    # weight (cheap lane-broadcast VPU multiply), then contract time with a STATIC
    # per-sample indicator matrix in one 2-D matmul -- no XLU sublane reduce.  The
    # constant-1 column of xs (column `ones_col`) makes the same matmul also produce
    # the softmax denominator, so no separate sum(p) reduce is needed either.
    wx = (p[:, :, 0:1] * xs3).reshape(rows, d_fused)         # (rows, d_fused) f32
    r_it = jax.lax.broadcasted_iota(jnp.int32, (bb, rows), 0)
    c_it = jax.lax.broadcasted_iota(jnp.int32, (bb, rows), 1)
    start = r_it * t_tile
    ind = ((c_it >= start) & (c_it < start + t_tile)).astype(jnp.float32)
    pv = jnp.dot(ind, wx, preferred_element_type=jnp.float32)   # (bb, d_fused)

    acc_sc[...] = alpha * acc_sc[...] + pv
    m_sc[...] = m_new

    @pl.when(t == pl.num_programs(1) - 1)
    def _finalize():
        acc = acc_sc[...]
        denom = acc[:, ones_col:ones_col + 1]                # (bb, 1) softmax denominator
        pooled = acc[:, :d_pad] * pl.reciprocal(denom, approx=True)
        logits_ref[...] = (jnp.dot(pooled.astype(wh_ref.dtype), wh_ref[...],
                                   preferred_element_type=jnp.float32)
                           + bh_ref[...])


def run_expert_logits(feat_pad, lengths, packed, bb, t_tile):
    """feat_pad: (B_pad, T_pad, Du_pad) bf16, lengths: (B_pad,) i32 -> (B_pad, C_pad) f32."""
    B_pad, T_pad, du_pad = feat_pad.shape
    d_pad, c_pad = packed["wh"].shape
    d_fused = packed["wc"].shape[1]
    nb = B_pad // bb
    nt = T_pad // t_tile

    kernel = functools.partial(_expert_kernel, bb=bb, t_tile=t_tile,
                               d_pad=d_pad, ones_col=d_pad + 1)
    vmem_limit = _vmem_limit_bytes(bb, t_tile, du_pad, d_fused, d_pad, c_pad)

    out = pl.pallas_call(
        kernel,
        out_shape=jax.ShapeDtypeStruct((nb, bb, c_pad), jnp.float32),
        grid_spec=pltpu.PrefetchScalarGridSpec(
            num_scalar_prefetch=1,
            grid=(nb, nt),
            in_specs=[
                # per (batch-block, time-block) bf16 feature tile; Pallas double-buffers
                # HBM->VMEM.  (On v5e, if DMA is exposed, bump to pl.Buffered(3).)
                pl.BlockSpec((bb, t_tile, du_pad), lambda b, t, lens: (b, t, 0)),
                # weights: constant block index -> VMEM-resident across the whole grid
                pl.BlockSpec((du_pad, d_fused), lambda b, t, lens: (0, 0)),
                pl.BlockSpec((1, d_fused), lambda b, t, lens: (0, 0)),
                pl.BlockSpec((d_pad, c_pad), lambda b, t, lens: (0, 0)),
                pl.BlockSpec((1, c_pad), lambda b, t, lens: (0, 0)),
            ],
            out_specs=pl.BlockSpec((None, bb, c_pad), lambda b, t, lens: (b, 0, 0)),
            scratch_shapes=[
                pltpu.VMEM((bb, LANE), jnp.float32),      # running max (lane 0 used)
                pltpu.VMEM((bb, d_fused), jnp.float32),   # running weighted sum + denom
            ],
        ),
        compiler_params=pltpu.CompilerParams(
            dimension_semantics=("parallel", "arbitrary"),
            vmem_limit_bytes=vmem_limit),
    )(lengths, feat_pad, packed["wc"], packed["bc"], packed["wh"], packed["bh"])
    return out.reshape(nb * bb, c_pad)


def pack_params(params, align):
    """Zero-pad weights to MXU-aligned shapes (bf16) and fuse the SAP score column plus
    a constant-1 column (softmax denominator) into the connector weight."""
    wc = np.asarray(params["wc"], np.float32)    # (Du, D)
    bc = np.asarray(params["bc"], np.float32)    # (D,)
    ws = np.asarray(params["ws"], np.float32)    # (D,)
    bs = float(params["bs"])
    wh = np.asarray(params["wh"], np.float32)    # (D, C)
    bh = np.asarray(params["bh"], np.float32)    # (C,)
    Du, D = wc.shape
    C = wh.shape[1]
    du_pad = _round_up(Du, align)
    d_pad = _round_up(D, align)
    c_pad = _round_up(C, align)
    d_fused = d_pad + align          # trailing group: lane 0 = SAP score, lane 1 = const 1

    score_w = wc @ ws                                        # (Du,)
    wcf = np.zeros((du_pad, d_fused), np.float32)
    wcf[:Du, :D] = wc
    wcf[:Du, d_pad] = score_w
    bcf = np.zeros((1, d_fused), np.float32)
    bcf[0, :D] = bc
    bcf[0, d_pad] = float(bc @ ws + bs)
    bcf[0, d_pad + 1] = 1.0                                  # constant-ones column

    whp = np.zeros((d_pad, c_pad), np.float32)
    whp[:D, :C] = wh
    bhp = np.zeros((1, c_pad), np.float32)
    bhp[0, :C] = bh
    return {
        "wc": jnp.asarray(wcf, jnp.bfloat16), "bc": jnp.asarray(bcf, jnp.float32),
        "wh": jnp.asarray(whp, jnp.bfloat16), "bh": jnp.asarray(bhp, jnp.float32),
        "du_pad": du_pad, "d_pad": d_pad, "c_pad": c_pad, "d_fused": d_fused,
        "num_classes": C,
    }


def pad_features(features, du_pad, max_t_tile=512, target_rows=256):
    """pad_sequence(batch_first=True) done host-side (numpy) with lane/sublane padding,
    bf16 feature stream, and batch-blocking so short utterances keep the MXU busy."""
    B = len(features)
    lengths = np.array([int(f.shape[0]) for f in features], np.int32)
    T_max = int(lengths.max())
    # time tile: multiple of 8 sublanes, capped at 512 frames (safe for v7x 64 MiB VMEM)
    t_tile = min(max_t_tile, _round_up(T_max, SUBLANE))
    # batch block: keep the connector matmul M-dim around `target_rows`, but keep >= 2
    # batch grid steps so both v7x TensorCores get work under the "parallel" axis.
    bb = max(1, min(target_rows // t_tile, 64))
    if B >= 2:
        bb = max(1, min(bb, (B + 1) // 2))
    nb = -(-B // bb)
    B_pad = nb * bb
    T_pad = _round_up(T_max, t_tile)
    Du = int(features[0].shape[1])
    feat = np.zeros((B_pad, T_pad, du_pad), np.float32)
    for i, f in enumerate(features):
        feat[i, :int(f.shape[0]), :Du] = np.asarray(f, np.float32)
    lens_pad = np.zeros((B_pad,), np.int32)
    lens_pad[:B] = lengths
    return jnp.asarray(feat, jnp.bfloat16), jnp.asarray(lens_pad), bb, t_tile


def downstream_forward(features, labels, params, values_per_slot, max_t_tile=512):
    """Mirrors DownstreamExpert.forward (loss + per-sample 'acc' record + predictions)."""
    align = _mxu_align()
    packed = pack_params(params, align)
    feat_pad, lengths, bb, t_tile = pad_features(features, packed["du_pad"], max_t_tile)

    logits_pad = run_expert_logits(feat_pad, lengths, packed, bb, t_tile)
    B = len(features)
    logits = logits_pad[:B, :packed["num_classes"]].astype(jnp.float32)   # (B, C)

    labels = jnp.stack(labels)                               # (B, n_slots) int32
    intent_loss = jnp.float32(0.0)
    predicted = []
    start = 0
    for slot, n in enumerate(values_per_slot):
        subset = logits[:, start:start + n]
        # nn.CrossEntropyLoss (mean reduction) == mean(-log_softmax[label])
        logp = subset - jax.nn.logsumexp(subset, axis=1, keepdims=True)
        nll = -jnp.take_along_axis(logp, labels[:, slot:slot + 1], axis=1)[:, 0]
        intent_loss = intent_loss + jnp.mean(nll)
        predicted.append(jnp.argmax(subset, axis=1))
        start += n
    predicted_intent = jnp.stack(predicted, axis=1)          # (B, n_slots)
    acc = jnp.prod((predicted_intent == labels).astype(jnp.float32), axis=1)
    return intent_loss, acc, predicted_intent, logits


def reference_logits(features, params):
    """Plain-JAX f32 reference of the torch forward hot path (for the sanity check)."""
    B = len(features)
    T = max(int(f.shape[0]) for f in features)
    Du = int(features[0].shape[1])
    feat = np.zeros((B, T, Du), np.float32)
    mask = np.zeros((B, T), np.float32)
    for i, f in enumerate(features):
        L = int(f.shape[0])
        feat[i, :L] = np.asarray(f, np.float32)
        mask[i, :L] = 1.0
    feat = jnp.asarray(feat)
    add_mask = jnp.asarray((1.0 - mask) * -100000.0)
    x = feat @ params["wc"] + params["bc"]                    # (B, T, D)
    scores = jnp.einsum("btd,d->bt", x, params["ws"]) + params["bs"] + add_mask
    att = jax.nn.softmax(scores, axis=-1)
    pooled = jnp.einsum("bt,btd->bd", att, x)
    return pooled @ params["wh"] + params["bh"]


def init_params(key, upstream_dim, input_dim, num_classes):
    k = jax.random.split(key, 6)
    s = 0.1
    return {
        "wc": jax.random.normal(k[0], (upstream_dim, input_dim), jnp.float32) * s,
        "bc": jax.random.normal(k[1], (input_dim,), jnp.float32) * s,
        "ws": jax.random.normal(k[2], (input_dim,), jnp.float32) * s,
        "bs": jax.random.normal(k[3], (), jnp.float32) * s,
        "wh": jax.random.normal(k[4], (input_dim, num_classes), jnp.float32) * s,
        "bh": jax.random.normal(k[5], (num_classes,), jnp.float32) * s,
    }


if __name__ == "__main__":
    key = jax.random.PRNGKey(0)
    upstream_dim = 32            # upstream representation dim
    input_dim = 32               # modelrc['input_dim']
    values_per_slot = [3, 4, 2]  # action / object / location class counts (synthetic)
    num_classes = sum(values_per_slot)

    kf, kp = jax.random.split(key, 2)
    # two variable-length utterance features (unpadded), like the dataloader output
    lengths = [8, 6]
    feat_keys = jax.random.split(kf, len(lengths))
    features = [jax.random.normal(feat_keys[i], (L, upstream_dim), jnp.float32)
                for i, L in enumerate(lengths)]
    labels = [jnp.array([1, 2, 0], jnp.int32), jnp.array([0, 3, 1], jnp.int32)]

    params = init_params(kp, upstream_dim, input_dim, num_classes)

    loss, acc, preds, logits = downstream_forward(features, labels, params, values_per_slot)
    jax.block_until_ready((loss, acc, preds, logits))

    ref = reference_logits(features, params)
    # bf16 feature/weight streaming vs the f32 reference: allow a small tolerance
    max_err = float(jnp.max(jnp.abs(logits - ref)))
    assert max_err < 2e-2, f"kernel/reference mismatch, max err {max_err}"
    assert loss.shape == () and bool(jnp.isfinite(loss))
    assert acc.shape == (len(lengths),)
    assert preds.shape == (len(lengths), len(values_per_slot))
    print("KERNEL_OK")
</pallas_src>

<mosaic_0001>
module attributes {stable_mosaic.version = 11 : i64} {
  func.func @_expert_kernel(%arg0: i32, %arg1: i32, %arg2: memref<2xi32, #tpu.memory_space<smem>>, %arg3: memref<1x8x128xbf16, #tpu.memory_space<vmem>>, %arg4: memref<128x256xbf16, #tpu.memory_space<vmem>>, %arg5: memref<1x256xf32, #tpu.memory_space<vmem>>, %arg6: memref<128x128xbf16, #tpu.memory_space<vmem>>, %arg7: memref<1x128xf32, #tpu.memory_space<vmem>>, %arg8: memref<1x1x128xf32, #tpu.memory_space<vmem>>, %arg9: memref<1x128xf32, #tpu.memory_space<vmem>>, %arg10: memref<1x256xf32, #tpu.memory_space<vmem>>) attributes {dimension_semantics = [#tpu.dimension_semantics<parallel>, #tpu.dimension_semantics<arbitrary>], iteration_bounds = array<i64: 2, 1>, scalar_prefetch = 1 : i64, scratch_operands = 2 : i64, tpu.core_type = #tpu.core_type<tc>, window_params = [{transform_indices = @transform_0, window_bounds = array<i64: 1, 8, 128>}, {pipeline_mode = #tpu.pipeline_mode<synchronous>, transform_indices = @transform_1, window_bounds = array<i64: 128, 256>}, {pipeline_mode = #tpu.pipeline_mode<synchronous>, transform_indices = @transform_2, window_bounds = array<i64: 1, 256>}, {pipeline_mode = #tpu.pipeline_mode<synchronous>, transform_indices = @transform_3, window_bounds = array<i64: 128, 128>}, {pipeline_mode = #tpu.pipeline_mode<synchronous>, transform_indices = @transform_4, window_bounds = array<i64: 1, 128>}, {transform_indices = @transform_5, window_bounds = array<i64: 1, 1, 128>}]} {
    %c0_i32 = arith.constant 0 : i32
    %0 = arith.cmpi eq, %arg1, %c0_i32 : i32
    %1 = arith.extui %0 : i1 to i32
    %c0_i32_0 = arith.constant 0 : i32
    %2 = arith.cmpi ne, %1, %c0_i32_0 : i32
    scf.if %2 {
      %cst_26 = arith.constant 0xFF800000 : f32
      %68 = vector.broadcast %cst_26 : f32 to vector<1x128xf32>
      %c0_27 = arith.constant 0 : index
      %c0_28 = arith.constant 0 : index
      %69 = vector.load %arg9[%c0_27, %c0_28] : memref<1x128xf32, #tpu.memory_space<vmem>>, vector<1x128xf32>
      tpu.vector_store %arg9[%c0_27, %c0_28], %68 {strides = array<i32>} : memref<1x128xf32, #tpu.memory_space<vmem>>, vector<1x128xf32>,
      %cst_29 = arith.constant 0.000000e+00 : f32
      %70 = vector.broadcast %cst_29 : f32 to vector<1x256xf32>
      %c0_30 = arith.constant 0 : index
      %c0_31 = arith.constant 0 : index
      %71 = vector.load %arg10[%c0_30, %c0_31] : memref<1x256xf32, #tpu.memory_space<vmem>>, vector<1x256xf32>
      tpu.vector_store %arg10[%c0_30, %c0_31], %70 {strides = array<i32>} : memref<1x256xf32, #tpu.memory_space<vmem>>, vector<1x256xf32>,
    } else {
    }
    %c0 = arith.constant 0 : index
    %c0_1 = arith.constant 0 : index
    %c0_2 = arith.constant 0 : index
    %3 = vector.load %arg3[%c0, %c0_1, %c0_2] : memref<1x8x128xbf16, #tpu.memory_space<vmem>>, vector<1x8x128xbf16>
    %4 = vector.shape_cast %3 : vector<1x8x128xbf16> to vector<8x128xbf16>
    %c0_3 = arith.constant 0 : index
    %c0_4 = arith.constant 0 : index
    %5 = vector.load %arg4[%c0_3, %c0_4] : memref<128x256xbf16, #tpu.memory_space<vmem>>, vector<128x256xbf16>
    %cst = arith.constant dense<0.000000e+00> : vector<8x256xf32>
    %6 = tpu.matmul %4, %5, %cst {dimension_numbers = #tpu.dot_dimension_numbers<[1], [0], [0], [1], [0, 0, 1, 1], [], []>} : vector<8x128xbf16>, vector<128x256xbf16>, vector<8x256xf32> -> vector<8x256xf32>
    %c0_5 = arith.constant 0 : index
    %c0_6 = arith.constant 0 : index
    %7 = vector.load %arg5[%c0_5, %c0_6] : memref<1x256xf32, #tpu.memory_space<vmem>>, vector<1x256xf32>
    %8 = vector.broadcast %7 : vector<1x256xf32> to vector<8x256xf32>
    %9 = arith.addf %6, %8 : vector<8x256xf32>
    %10 = vector.shape_cast %9 : vector<8x256xf32> to vector<1x8x256xf32>
    %c1_i32 = arith.constant 1 : i32
    %11 = arith.muli %arg0, %c1_i32 : i32
    %12 = tpu.iota {dimensions = array<i32: 0>} : vector<1x1x128xi32>
    %c0_i32_7 = arith.constant 0 : i32
    %13 = vector.broadcast %c0_i32_7 : i32 to vector<1x1x128xi32>
    %c0_i32_8 = arith.constant 0 : i32
    %14 = vector.broadcast %c0_i32_8 : i32 to vector<1x1x128xi32>
    %15 = arith.cmpi eq, %12, %14 : vector<1x1x128xi32>
    %c0_i32_9 = arith.constant 0 : i32
    %16 = arith.addi %11, %c0_i32_9 : i32
    %17 = arith.index_cast %16 : i32 to index
    %18 = memref.load %arg2[%17] : memref<2xi32, #tpu.memory_space<smem>>
    %19 = vector.broadcast %18 : i32 to vector<1x1x128xi32>
    %20 = arith.select %15, %19, %13 : vector<1x1x128xi1>, vector<1x1x128xi32>
    %c8_i32 = arith.constant 8 : i32
    %21 = arith.muli %arg1, %c8_i32 : i32
    %22 = tpu.iota {dimensions = array<i32: 1>} : vector<1x8x128xi32>
    %23 = vector.broadcast %21 : i32 to vector<1x8x128xi32>
    %24 = arith.addi %23, %22 : vector<1x8x128xi32>
    %25 = vector.extract_strided_slice %10 {offsets = [0, 0, 128], sizes = [1, 8, 128], strides = [1, 1, 1]} : vector<1x8x256xf32> to vector<1x8x128xf32>
    %26 = vector.broadcast %20 : vector<1x1x128xi32> to vector<1x8x128xi32>
    %27 = arith.cmpi slt, %24, %26 : vector<1x8x128xi32>
    %cst_10 = arith.constant 0.000000e+00 : f32
    %cst_11 = arith.constant -1.000000e+05 : f32
    %28 = vector.broadcast %cst_10 : f32 to vector<1x8x128xf32>
    %29 = vector.broadcast %cst_11 : f32 to vector<1x8x128xf32>
    %30 = arith.select %27, %28, %29 : vector<1x8x128xi1>, vector<1x8x128xf32>
    %31 = arith.addf %25, %30 : vector<1x8x128xf32>
    %c0_12 = arith.constant 0 : index
    %c0_13 = arith.constant 0 : index
    %32 = vector.load %arg9[%c0_12, %c0_13] : memref<1x128xf32, #tpu.memory_space<vmem>>, vector<1x128xf32>
    %cst_14 = arith.constant dense<0xFF800000> : vector<1x128xf32>
    %33 = vector.multi_reduction <maximumf>, %31, %cst_14 [1] : vector<1x8x128xf32> to vector<1x128xf32>
    %34 = arith.maximumf %32, %33 : vector<1x128xf32>
    %35 = vector.extract_strided_slice %32 {offsets = [0, 0], sizes = [1, 1], strides = [1, 1]} : vector<1x128xf32> to vector<1x1xf32>
    %36 = vector.extract_strided_slice %34 {offsets = [0, 0], sizes = [1, 1], strides = [1, 1]} : vector<1x128xf32> to vector<1x1xf32>
    %37 = arith.subf %35, %36 : vector<1x1xf32>
    %38 = math.exp %37 : vector<1x1xf32>
    %39 = vector.shape_cast %34 : vector<1x128xf32> to vector<1x1x128xf32>
    %40 = vector.broadcast %39 : vector<1x1x128xf32> to vector<1x8x128xf32>
    %41 = arith.subf %31, %40 : vector<1x8x128xf32>
    %42 = math.exp %41 : vector<1x8x128xf32>
    %43 = vector.extract_strided_slice %42 {offsets = [0, 0, 0], sizes = [1, 8, 1], strides = [1, 1, 1]} : vector<1x8x128xf32> to vector<1x8x1xf32>
    %44 = vector.broadcast %43 : vector<1x8x1xf32> to vector<1x8x256xf32>
    %45 = arith.mulf %44, %10 : vector<1x8x256xf32>
    %46 = vector.shape_cast %45 : vector<1x8x256xf32> to vector<8x256xf32>
    %47 = tpu.iota {dimensions = array<i32: 0>} : vector<1x8xi32>
    %48 = tpu.iota {dimensions = array<i32: 1>} : vector<1x8xi32>
    %c8_i32_15 = arith.constant 8 : i32
    %49 = vector.broadcast %c8_i32_15 : i32 to vector<1x8xi32>
    %50 = arith.muli %47, %49 : vector<1x8xi32>
    %51 = arith.cmpi sge, %48, %50 : vector<1x8xi32>
    %c8_i32_16 = arith.constant 8 : i32
    %52 = vector.broadcast %c8_i32_16 : i32 to vector<1x8xi32>
    %53 = arith.addi %50, %52 : vector<1x8xi32>
    %54 = arith.cmpi slt, %48, %53 : vector<1x8xi32>
    %55 = arith.andi %51, %54 : vector<1x8xi1>
    %56 = arith.extui %55 : vector<1x8xi1> to vector<1x8xi32>
    %57 = arith.sitofp %56 : vector<1x8xi32> to vector<1x8xf32>
    %cst_17 = arith.constant dense<0.000000e+00> : vector<1x256xf32>
    %58 = tpu.matmul %57, %46, %cst_17 {dimension_numbers = #tpu.dot_dimension_numbers<[1], [0], [0], [1], [0, 0, 1, 1], [], []>} : vector<1x8xf32>, vector<8x256xf32>, vector<1x256xf32> -> vector<1x256xf32>
    %c0_18 = arith.constant 0 : index
    %c0_19 = arith.constant 0 : index
    %59 = vector.load %arg10[%c0_18, %c0_19] : memref<1x256xf32, #tpu.memory_space<vmem>>, vector<1x256xf32>
    %60 = vector.broadcast %38 : vector<1x1xf32> to vector<1x256xf32>
    %61 = arith.mulf %60, %59 : vector<1x256xf32>
    %62 = arith.addf %61, %58 : vector<1x256xf32>
    %c0_20 = arith.constant 0 : index
    %c0_21 = arith.constant 0 : index
    %63 = vector.load %arg10[%c0_20, %c0_21] : memref<1x256xf32, #tpu.memory_space<vmem>>, vector<1x256xf32>
    tpu.vector_store %arg10[%c0_20, %c0_21], %62 {strides = array<i32>} : memref<1x256xf32, #tpu.memory_space<vmem>>, vector<1x256xf32>,
    %c0_22 = arith.constant 0 : index
    %c0_23 = arith.constant 0 : index
    %64 = vector.load %arg9[%c0_22, %c0_23] : memref<1x128xf32, #tpu.memory_space<vmem>>, vector<1x128xf32>
    tpu.vector_store %arg9[%c0_22, %c0_23], %34 {strides = array<i32>} : memref<1x128xf32, #tpu.memory_space<vmem>>, vector<1x128xf32>,
    %c0_i32_24 = arith.constant 0 : i32
    %65 = arith.cmpi eq, %arg1, %c0_i32_24 : i32
    %66 = arith.extui %65 : i1 to i32
    %c0_i32_25 = arith.constant 0 : i32
    %67 = arith.cmpi ne, %66, %c0_i32_25 : i32
    scf.if %67 {
      %c0_26 = arith.constant 0 : index
      %c0_27 = arith.constant 0 : index
      %68 = vector.load %arg10[%c0_26, %c0_27] : memref<1x256xf32, #tpu.memory_space<vmem>>, vector<1x256xf32>
      %69 = vector.extract_strided_slice %68 {offsets = [0, 129], sizes = [1, 1], strides = [1, 1]} : vector<1x256xf32> to vector<1x1xf32>
      %70 = vector.extract_strided_slice %68 {offsets = [0, 0], sizes = [1, 128], strides = [1, 1]} : vector<1x256xf32> to vector<1x128xf32>
      %71 = tpu.reciprocal %69 {approx = true} : vector<1x1xf32> -> vector<1x1xf32>
      %72 = vector.broadcast %71 : vector<1x1xf32> to vector<1x128xf32>
      %73 = arith.mulf %70, %72 : vector<1x128xf32>
      %74 = arith.truncf %73 : vector<1x128xf32> to vector<1x128xbf16>
      %c0_28 = arith.constant 0 : index
      %c0_29 = arith.constant 0 : index
      %75 = vector.load %arg6[%c0_28, %c0_29] : memref<128x128xbf16, #tpu.memory_space<vmem>>, vector<128x128xbf16>
      %cst_30 = arith.constant dense<0.000000e+00> : vector<1x128xf32>
      %76 = tpu.matmul %74, %75, %cst_30 {dimension_numbers = #tpu.dot_dimension_numbers<[1], [0], [0], [1], [0, 0, 1, 1], [], []>} : vector<1x128xbf16>, vector<128x128xbf16>, vector<1x128xf32> -> vector<1x128xf32>
      %c0_31 = arith.constant 0 : index
      %c0_32 = arith.constant 0 : index
      %77 = vector.load %arg7[%c0_31, %c0_32] : memref<1x128xf32, #tpu.memory_space<vmem>>, vector<1x128xf32>
      %78 = arith.addf %76, %77 : vector<1x128xf32>
      %c0_33 = arith.constant 0 : index
      %c0_34 = arith.constant 0 : index
      %c0_35 = arith.constant 0 : index
      %79 = vector.load %arg8[%c0_33, %c0_34, %c0_35] : memref<1x1x128xf32, #tpu.memory_space<vmem>>, vector<1x1x128xf32>
      %80 = vector.shape_cast %79 : vector<1x1x128xf32> to vector<1x128xf32>
      %81 = vector.shape_cast %78 : vector<1x128xf32> to vector<1x1x128xf32>
      tpu.vector_store %arg8[%c0_33, %c0_34, %c0_35], %81 {strides = array<i32>} : memref<1x1x128xf32, #tpu.memory_space<vmem>>, vector<1x1x128xf32>,
    } else {
    }
    return
  }
  func.func @transform_0(%arg0: i32, %arg1: i32, %arg2: memref<2xi32, #tpu.memory_space<smem>>) -> (i32, i32, i32) {
    %c0_i32 = arith.constant 0 : i32
    %c0_i32_0 = arith.constant 0 : i32
    return %arg0, %arg1, %c0_i32 : i32, i32, i32
  }
  func.func @transform_1(%arg0: i32, %arg1: i32, %arg2: memref<2xi32, #tpu.memory_space<smem>>) -> (i32, i32) {
    %c0_i32 = arith.constant 0 : i32
    %c0_i32_0 = arith.constant 0 : i32
    %c0_i32_1 = arith.constant 0 : i32
    return %c0_i32, %c0_i32_0 : i32, i32
  }
  func.func @transform_2(%arg0: i32, %arg1: i32, %arg2: memref<2xi32, #tpu.memory_space<smem>>) -> (i32, i32) {
    %c0_i32 = arith.constant 0 : i32
    %c0_i32_0 = arith.constant 0 : i32
    %c0_i32_1 = arith.constant 0 : i32
    return %c0_i32, %c0_i32_0 : i32, i32
  }
  func.func @transform_3(%arg0: i32, %arg1: i32, %arg2: memref<2xi32, #tpu.memory_space<smem>>) -> (i32, i32) {
    %c0_i32 = arith.constant 0 : i32
    %c0_i32_0 = arith.constant 0 : i32
    %c0_i32_1 = arith.constant 0 : i32
    return %c0_i32, %c0_i32_0 : i32, i32
  }
  func.func @transform_4(%arg0: i32, %arg1: i32, %arg2: memref<2xi32, #tpu.memory_space<smem>>) -> (i32, i32) {
    %c0_i32 = arith.constant 0 : i32
    %c0_i32_0 = arith.constant 0 : i32
    %c0_i32_1 = arith.constant 0 : i32
    return %c0_i32, %c0_i32_0 : i32, i32
  }
  func.func @transform_5(%arg0: i32, %arg1: i32, %arg2: memref<2xi32, #tpu.memory_space<smem>>) -> (i32, i32, i32) {
    %c0_i32 = arith.constant 0 : i32
    %c0_i32_0 = arith.constant 0 : i32
    %c0_i32_1 = arith.constant 0 : i32
    return %arg0, %c0_i32, %c0_i32_0 : i32, i32, i32
  }
}

</mosaic_0001>

<bundles_post_ra>
// kernel: tpu_custom_call.1
= control target key start
LH: loop header
LB: loop body
LE: loop exit
PB: predicated region body
PF: predicated region fallthrough
CT: control target
= control target key end

     0   :  { %s1221_s21 = smov [#allocation5]   ;;  %s1501_s0 = inlined_call_operand.hbm [shape: s32[2], index: 0, kind: input, shape index: {}]   ;;  %s1502_s1 = inlined_call_operand.hbm [shape: bf16[2,8,128], index: 1, kind: input, shape index: {}]   ;;  %s1503_s2 = inlined_call_operand.hbm [shape: bf16[128,256], index: 2, kind: input, shape index: {}]   ;;  %s1504_s3 = inlined_call_operand.vmem [shape: f32[1,256], index: 3, kind: input, shape index: {}]   ;;  %s1505_s4 = inlined_call_operand.hbm [shape: bf16[128,128], index: 4, kind: input, shape index: {}]   ;;  %s1506_s5 = inlined_call_operand.vmem [shape: f32[1,128], index: 5, kind: input, shape index: {}]   ;;  %s1507_s6 = inlined_call_operand.hbm [shape: f32[2,1,128], index: 6, kind: output, shape index: {}]  }
   0x1   :  { %1511 = sst [smem:[#allocation17_spill]] %s1503_s2 }
   0x2   :  { %12 = dma.hbm_to_smem %s1501_s0, 16, %s1221_s21, [#allocation4] }
   0x3   :  { %1183 = dma.done.wait [#allocation4], 16 }
   0x4   :  { %1184 = vsyncadd [#allocation4], 4294967280 }
   0x5   :  { %14 = sfence }
   0x6   :  { %15 = vsyncpa [#allocation7], 0 }
   0x7   :  { %17 = vsyncpa [#allocation7 + $0x1], 0 }
   0x8   :  { %18 = vsyncpa [#allocation10], 0 }
   0x9   :  { %19 = vsyncpa [#allocation8], 0 }
   0xa   :  { %21 = vsyncpa [#allocation8 + $0x1], 0  ;;  %s1275_s24 = smov 0   ;;  %s1277_s25 = smov 0  }
   0xb   :  { %s1279_s26 = smov 0   ;;  %s1281_s27 = smov 0  }
   0xc   :  { %s1283_s28 = smov 0   ;;  %s1285_s29 = smov 0  }
   0xd LB: > { %s840_s0 = sadd.s32 4294967295, %s1219_s29   ;;  %s841_s30 = sadd.s32 4294967294, %s1219_s29   ;;  %s1219_s29 = sphi %s1285_s29, %s27_s29   ;;  %s1215_s28 = sphi %s1283_s28, %s1531_s28   ;;  %s1211_s27 = sphi %s1281_s27, %s1530_s27   ;;  %s1207_s26 = sphi %s1279_s26, %s1529_s26   ;;  %s1203_s25 = sphi %s1277_s25, %s1528_s25   ;;  %s1199_s24 = sphi %s1275_s24, %s1527_s24  }
   0xe   : > { %p61_p0 = scmp.ne.s32.totalorder %s1203_s25, %s1199_s24  ;;  %p1309_p1 = scmp.eq.s32.totalorder %s840_s0, 0 }
   0xf   : > { %p1313_p2 = scmp.eq.s32.totalorder %s840_s0, 1  ;;  %p175_p3 = scmp.eq.s32.totalorder %s841_s30, 1 }
  0x10   : > { %s1512_s7 = scalar_select %p1309_p1, 1, 0 }
  0x11   : > { %p1319_p4 = por %p1309_p1, %p61_p0  ;;  %p842_p5 = scmp.ge.s32.totalorder %s1219_s29, 1 }
  0x12   : > { %p1324_p6 = por %p175_p3, %p61_p0  ;;  %p182_p7 = scmp.lt.s32.totalorder %s1219_s29, 3 }
  0x13   : > { %s1514_s9 = scalar_select %p1319_p4, 1, 0 }
  0x14   : > { %s1515_s10 = scalar_select %p1324_p6, 1, 0 }
  0x15   : > { %p1329_p8 = pnand %p842_p5, %p182_p7  ;;  %s1222_s12 = smov [#allocation9]  }
  0x16   : > { %s194_s13 = sshll.u32 %s1222_s12, 4  ;;  %s1223_s15 = smov [#allocation11]   ;;  %s195_s13 = int_to_ptr.vmem [resolvable:$true] %s194_s13 }
  0x17   : > { %p922_p9 = pneg %p1329_p8  ;;  %s210_s16 = sshll.u32 %s1223_s15, 4  ;;  %s211_s16 = int_to_ptr.vmem [resolvable:$true] %s210_s16 }
  0x18   : > { %s1064_s17 = scalar_lea.vmem %s195_s13, 2048  ;;  %p1072_p5 = scmp.lt.s32.totalorder %s195_s13, %s195_s13 }
  0x19   : > { %p1338_p11 = pnand %p922_p9, %p1309_p1  ;;  %p1065_p13 = scmp.ne.s32.totalorder %s195_s13, %s1064_s17 }
  0x1a   : > { %p1073_p7 = scmp.lt.s32.totalorder %s1064_s17, %s1064_s17 }
  0x1b   : > { %p1055_p12 = pneg %p1338_p11 }
  0x1c   : > { %p1074_p10 = por %p1073_p7, %p1072_p5 }
  0x1d   : > { %p1067_p0 = pnand %p1065_p13, %p1055_p12 }
  0x1f   : > { %p1068_p3 = pneg %p1067_p0 }
  0x21   : > { %p1075_p9 = pnand %p1074_p10, %p1068_p3 }
  0x23   : > { %1078 = shalt.err (!%p1075_p9)
}
  0x24   : > { %s1224_s18 = smov 128   ;;  %s1225_s19 = smov 8  }
  0x25   : > { %s1518_s2 = sld [smem:[#allocation17_spill]]  ;;  %s1090_s22 = scalar_lea.vmem %s211_s16, 1024 }
  0x26   : > { %p1091_p6 = scmp.ne.s32.totalorder %s211_s16, %s1090_s22  ;;  %p1098_p1 = scmp.lt.s32.totalorder %s211_s16, %s211_s16 }
  0x27   : > { %p1099_p4 = scmp.lt.s32.totalorder %s1090_s22, %s1090_s22 }
  0x28   : > { %p1093_p13 = pnand %p1091_p6, %p1055_p12 }
  0x29   : > { %p1100_p5 = por %p1099_p4, %p1098_p1 }
  0x2a   : > { %p1094_p0 = pneg %p1093_p13 }
  0x2b   : > { %925 = dma.hbm_to_vmem [thread:$0]  (!%p1338_p11), %s1518_s2, 2048, %s195_s13, [#allocation10], %s1224_s18, %s1224_s18, %s1225_s19  }
  0x2c   : > { %p1101_p10 = pnand %p1100_p5, %p1094_p0 }
  0x2e   : > { %1104 = shalt.err (!%p1101_p10)
}
  0x2f   : > { %s1226_s23 = smov 64   ;;  %s1227_s0 = smov 4  }
  0x30   : > { %928 = dma.hbm_to_vmem [thread:$0]  (!%p1338_p11), %s1505_s4, 1024, %s211_s16, [#allocation10], %s1226_s23, %s1226_s23, %s1227_s0  }
  0x31   : > { %s39_s13 = sadd.s32 1, %s1215_s28  ;;  %s48_s15 = sadd.s32 1, %s1207_s26 }
  0x32   : > { %p41_p1 = scmp.ge.s32.totalorder %s39_s13, 2  ;;  %p55_p4 = scmp.ne.s32.totalorder %s1207_s26, %s1203_s25 }
  0x33   : > { %p56_p6 = scmp.eq.s32.totalorder %s1219_s29, 0  ;;  %p939_p12 = scmp.lt.s32.totalorder %s1219_s29, 2 }
  0x34   : > { %s1533_s13 = smov (%p41_p1, %s39_s13), 0  ;;  %p1370_p7 = por %p1313_p2, %p55_p4 }
  0x35   : > { %p57_p3 = por %p56_p6, %p55_p4  ;;  %s43_s14 = ssub.s32 %s1215_s28, %s1533_s13 }
  0x36   : > { %s227_s18 = sand.u32 1, %s1207_s26   ;;  %p46_p9 = scmp.eq.s32.totalorder %s43_s14, 0 }
  0x37   : > { %s846_s16 = sshll.u32 %s227_s18, 2  ;;  %s847_s19 = sshll.u32 %s1215_s28, 6 }
  0x38   : > { %s1379_s20 = scalar_select %p46_p9, %s1207_s26, %s48_s15  }
  0x39   : > { %s237_s23 = scalar_lea.hbm %s1502_s1, %s847_s19  ;;  %s231_s0 = scalar_lea.vmem [#allocation6], %s846_s16 }
  0x3a   : > { %s239_s30 = sshll.u32 %s231_s0, 4  ;;  %p1386_p11 = pnand %p939_p12, %p57_p3  ;;  %s240_s30 = int_to_ptr.vmem [resolvable:$true] %s239_s30 }
  0x3b   : > { %s228_s12 = scalar_lea.sflag [#allocation7], %s227_s18  ;;  %s1118_s14 = scalar_lea.vmem %s240_s30, 64 }
  0x3c   : > { %p1107_p2 = pneg %p1386_p11  ;;  %p1119_p13 = scmp.ne.s32.totalorder %s240_s30, %s1118_s14 }
  0x3d   : > { %s1228_s15 = smov [#allocation6]  }
  0x3e   : > { %p1121_p0 = pnand %p1119_p13, %p1107_p2  ;;  %s1123_s2 = sshll.u32 %s1228_s15, 4  ;;  %s1124_s2 = int_to_ptr.vmem [resolvable:$false] %s1123_s2 }
  0x3f   : > { %s1125_s19 = scalar_lea.vmem %s1124_s2, 128  ;;  %p1126_p10 = scmp.lt.s32.totalorder %s240_s30, %s1124_s2 }
  0x40   : > { %p1122_p5 = pneg %p1121_p0  ;;  %p1127_p1 = scmp.lt.s32.totalorder %s1125_s19, %s1118_s14 }
  0x42   : > { %p1128_p4 = por %p1127_p1, %p1126_p10 }
  0x44   : > { %p1129_p6 = pnand %p1128_p4, %p1122_p5 }
  0x46   : > { %1132 = shalt.err (!%p1129_p6)
}
  0x47   : > { %932 = dma.hbm_to_vmem [thread:$0]  (!%p1386_p11), %s237_s23, 64, %s240_s30, %s228_s12  }
  0x48   : > { %248 = sbr.rel (%p1329_p8) target bundleno = 1158 (0x486), region = 40  ;;  %s1397_s18 = sand.u32 (!%p1329_p8), 1, %s1203_s25  }
  0x49   : > { %s849_s16 = sshll.u32 (!%p1329_p8), %s1397_s18, 2  ;;  %s251_s21 = scalar_lea.sflag (!%p1329_p8), [#allocation7], %s1397_s18 }
  0x4a   : > { %s1401_s22 = scalar_lea.vmem (!%p1329_p8), [#allocation6], %s849_s16  ;;  %p1521_p12 = scmp.ne.s32.totalorder (!%p1329_p8), %s1514_s9, 0 }
  0x4d   : > { %1186 = dma.done.wait (%p1521_p12), %s251_s21, 64  }
  0x4e   : > { %1188 = vsyncadd (%p1521_p12), %s251_s21, 4294967232  ;;  %p1522_p3 = scmp.ne.s32.totalorder %s1512_s7, 0 }
  0x50   : > { %1190 = dma.done.wait (%p1522_p3), [#allocation10], 3072  }
  0x51   : > { %1192 = vsyncadd (%p1522_p3), [#allocation10], 4294964224  ;;  %v294_v0 = vlaneseq  ;;  %v1229_v1 = vmov 0   ;;  %v1230_v3 = vmov 0.0   ;;  %v1007_v4 = vld [vmem:[#allocation9 + $0x74] ss:$8 sps:$4 sm:$0xff]  }
  0x52   : > { %440 = vmatprep.mubr.bf16.mxu0 %v1229_v1  ;;  %1005 = vset.pattern.permute.xlu0 %v1229_v1  ;;  %v1009_v5 = vld [vmem:[#allocation9 + $0x70] ss:$8 sps:$4 sm:$0xff]   ;;  %v1010_v6 = vld [vmem:[#allocation9 + $0x64] ss:$8 sps:$4 sm:$0xff]   ;;  %v1012_v7 = vld [vmem:[#allocation9 + $0x60] ss:$8 sps:$4 sm:$0xff]  }
  0x53   : > { %vm1412_vm0 = vcmp.lt.s32.totalorder %v294_v0, 256  ;;  %563 = vmatprep.mubr.f32.mxu1 %v1230_v3  ;;  %1006 = vset.pattern.permute.xlu1 %v1229_v1  ;;  %v1013_v8 = vld [vmem:[#allocation9 + $0x54] ss:$8 sps:$4 sm:$0xff]   ;;  %v1015_v9 = vld [vmem:[#allocation9 + $0x50] ss:$8 sps:$4 sm:$0xff]   ;;  %v1231_v21 = vmov -inf  }
  0x54   : > { %298 = vst.msk [vmem:[#allocation3] sm:$0x3] %vm1412_vm0, %v1230_v3  ;;  %408 = vmatprep.subr.bf16.mxu0 %v1007_v4  ;;  %v1016_v10 = vld [vmem:[#allocation9 + $0x44] ss:$8 sps:$4 sm:$0xff]   ;;  %v1018_v11 = vld [vmem:[#allocation9 + $0x40] ss:$8 sps:$4 sm:$0xff]  }
  0x55   : > { %409 = vmatpush1.bf16.msra.mxu0 %v1009_v5  ;;  %v1019_v12 = vld [vmem:[#allocation9 + $0x34] ss:$8 sps:$4 sm:$0xff]   ;;  %v1021_v13 = vld [vmem:[#allocation9 + $0x30] ss:$8 sps:$4 sm:$0xff]   ;;  %v1022_v14 = vld [vmem:[#allocation9 + $0x24] ss:$8 sps:$4 sm:$0xff]  }
  0x56   : > { %410 = vmatprep.subr.bf16.mxu0 %v1010_v6  ;;  %v1024_v15 = vld [vmem:[#allocation9 + $0x20] ss:$8 sps:$4 sm:$0xff]   ;;  %v1025_v16 = vld [vmem:[#allocation9 + $0x14] ss:$8 sps:$4 sm:$0xff]   ;;  %v1027_v17 = vld [vmem:[#allocation9 + $0x10] ss:$8 sps:$4 sm:$0xff]  }
  0x57   : > { %v1028_v18 = vld [vmem:[#allocation9 + $0x4] ss:$8 sps:$4 sm:$0xff]   ;;  %v1030_v19 = vld [vmem:[#allocation9] ss:$8 sps:$4 sm:$0xff]   ;;  %v299_v20 = vld [vmem:[%s1401_s22] sm:$0xf] }
  0x58   : > { %293 = vst [vmem:[#allocation2] sm:$0x1] %v1231_v21  ;;  %s449_s2 = sld [smem:[#allocation5 + %s1211_s27]]  ;;  %v319_v22 = vshrl.u32 %v294_v0, 7  ;;  %v316_v25 = vld [vmem:[%s1504_s3] sm:$0x3] }
  0x59   : > { %411 = vmatpush1.bf16.msra.mxu0 %v1012_v7  ;;  %v1232_v29 = vmov -100000.0   ;;  %v487_v52 = vand.u32 127, %v294_v0  ;;  %vm495_vm5 = vcmask 64512   ;;  %v1233_v60 = vmov 1966171168   ;;  %s1234_s11 = smov 127  }
  0x5a   : > { %412 = vmatprep.subr.bf16.mxu0 %v1013_v8  ;;  %v324_v23 = vsub.s32 1, %v319_v22  ;;  %v1426_v42 = vsub.s32 0, %v319_v22  ;;  %v488_v51 = vmul.u32 8, %v319_v22  ;;  %v585_v61 = vunpack.c.l.s4 %v1233_v60  ;;  %v1036_v2 = vld [vmem:[#allocation11 + $0x10] sm:$0xff]   ;;  %v1038_v21 = vld [vmem:[#allocation11] sm:$0xff]   ;;  %s878_s30 = sshll.u32 %s1211_s27, 4 }
  0x5b   : > { %v570_v7 = vld [vmem:[#allocation3] sm:$0x3]  ;;  %vm1235_vm6 = vmmov 0   ;;  %s287_s8 = scalar_lea.vmem [#allocation12], %s1397_s18  ;;  %s1453_s19 = scalar_lea.hbm %s1507_s6, %s878_s30 }
  0x5c   : > { %v325_v26 = vrot.slane %v316_v25, %v324_v23  ;;  %v490_v53 = vadd.s32 8, %v488_v51  ;;  %v321_v54 = vrot.slane %v316_v25, %v1426_v42  ;;  %vm489_vm2 = vcmp.ge.s32.totalorder %v487_v52, %v488_v51  ;;  %s746_s12 = sshll.u32 %s287_s8, 4  ;;  %s734_s16 = scalar_lea.sflag [#allocation8], %s1397_s18  ;;  %s1455_s12 = int_to_ptr.vmem [resolvable:$true] %s746_s12 }
  0x5d   : > { %413 = vmatpush1.bf16.msra.mxu0 %v1015_v9  ;;  %v586_v62 = vunpack.c.0.s8 %v585_v61  ;;  %s1133_s21 = scalar_lea.vmem %s1455_s12, 16  ;;  %s1236_s27 = smov [#allocation12]  }
  0x5e   : > { %414 = vmatprep.subr.bf16.mxu0 %v1016_v10  ;;  %v450_v24 = vstv %s449_s2  ;;  %vm491_vm3 = vcmp.lt.s32.totalorder %v487_v52, %v490_v53  ;;  %p1134_p8 = scmp.ne.s32.totalorder %s1455_s12, %s1133_s21  ;;  %s1137_s22 = sshll.u32 %s1236_s27, 4  ;;  %s1138_s22 = int_to_ptr.vmem [resolvable:$false] %s1137_s22 }
  0x5f   : > { %vm456_vm1 = vcmp.lt.s32.totalorder %v319_v22, %v450_v24  ;;  %v459_v40 = vld [vmem:[#allocation2] sm:$0x1]  ;;  %vm492_vm4 = vmand %vm489_vm2, %vm491_vm3  ;;  %v589_v1 = vsub.s32 %v586_v62, %v319_v22  ;;  %s1139_s2 = scalar_lea.vmem %s1138_s22, 32  ;;  %p1140_p2 = scmp.lt.s32.totalorder %s1455_s12, %s1138_s22 }
  0x60   : > { %v457_v30 = vsel %vm456_vm1, 0.0, %v1232_v29  ;;  %v868_v59 = vsel %vm492_vm4, 1.0, %v1230_v3  ;;  %p1135_p9 = pnand %p1134_p8, %p1370_p7  ;;  %p1141_p13 = scmp.lt.s32.totalorder %s1139_s2, %s1133_s21 }
  0x61   : > { %415 = vmatpush1.bf16.msra.mxu0 %v1018_v11 }
  0x62   : > { %416 = vmatprep.subr.bf16.mxu0 %v1019_v12  ;;  %p1136_p11 = pneg %p1135_p9  ;;  %p1142_p0 = por %p1141_p13, %p1140_p2 }
  0x64   : > { %p1143_p5 = pnand %p1142_p0, %p1136_p11 }
  0x65   : > { %417 = vmatpush1.bf16.msra.mxu0 %v1021_v13  ;;  %v1031_v13 = vld [vmem:[#allocation11 + $0x38] sm:$0xff]  }
  0x66   : > { %418 = vmatprep.subr.bf16.mxu0 %v1022_v14  ;;  %v1032_v14 = vld [vmem:[#allocation11 + $0x30] sm:$0xff]  }
  0x69   : > { %419 = vmatpush1.bf16.msra.mxu0 %v1024_v15  ;;  %v1033_v15 = vld [vmem:[#allocation11 + $0x28] sm:$0xff]  }
  0x6a   : > { %420 = vmatprep.subr.bf16.mxu0 %v1025_v16  ;;  %v1034_v16 = vld [vmem:[#allocation11 + $0x20] sm:$0xff]  }
  0x6d   : > { %421 = vmatpush1.bf16.msra.mxu0 %v1027_v17  ;;  %v1035_v17 = vld [vmem:[#allocation11 + $0x18] sm:$0xff]  }
  0x6e   : > { %422 = vmatprep.subr.bf16.mxu0 %v1028_v18  ;;  %v1037_v18 = vld [vmem:[#allocation11 + $0x8] sm:$0xff]  }
  0x71   : > { %423 = vmatpush1.bf16.msra.mxu0 %v1030_v19 }
  0x74   : > { %441 = vmatmul.mubr.bf16.vlgmr.msra.gmra.mxu0 %v299_v20 }
 0x134   : > { %v442_v27 = vpop.f32.mrf.mxu0 }
 0x135   : > { %v443_v55 = vadd.f32 %v442_v27, %v321_v54  ;;  %v643_v27 = vld [vmem:[%s1506_s5] sm:$0x1] }
 0x136   : > { %v444_v28 = vpop.f32.mrf.mxu0 }
 0x137   : > { %v445_v31 = vadd.f32 %v444_v28, %v325_v26 }
 0x138   : > { %v446_v32 = vpop.f32.mrf.mxu0 }
 0x139   : > { %v458_v33 = vadd.f32 %v457_v30, %v445_v31 }
 0x13a   : > { %v447_v34 = vpop.f32.mrf.mxu0 }
 0x13b   : > { %v460_v35 = vrot.slane %v458_v33, 4 }
 0x13d   : > { %v461_v36 = vmax.f32 %v458_v33, %v460_v35 }
 0x13f   : > { %v462_v37 = vrot.slane %v461_v36, 2 }
 0x141   : > { %v463_v38 = vmax.f32 %v461_v36, %v462_v37 }
 0x143   : > { %v464_v39 = vrot.slane %v463_v38, 1 }
 0x145   : > { %v465_v41 = vmax.f32 %v463_v38, %v464_v39 }
 0x147   : > { %v466_v43 = vmax.f32 %v459_v40, %v465_v41 }
 0x149   : > { %v474_v44 = vrot.slane %v466_v43, %v1426_v42  ;;  %605 = vst [vmem:[#allocation2] sm:$0x1] %v466_v43  ;;  %v467_v45 = vsub.f32 %v459_v40, %v466_v43 }
 0x14b   : > { %v476_v46 = vsub.f32 %v458_v33, %v474_v44  ;;  %v468_v48 = vmul.f32 1.442695, %v467_v45 }
 0x14d   : > { %v477_v47 = vmul.f32 1.442695, %v476_v46 }
 0x14f   : > { %1039 = vpow2.f32 %v477_v47 }
 0x150   : > { %1041 = vpow2.f32 %v468_v48 }
 0x15c   : > { %v1040_v49 = vpop.eup %1039 }
 0x15d   : > { %481 = vperm.xlu0 %1005, %v1040_v49   ;;  %v1042_v50 = vpop.eup %1041 }
 0x161   : > { %573 = vperm.xlu0 %1005, %v1042_v50  }
 0x1d8   : > { %v482_v56 = vpop.permute.xlu0 %481 }
 0x1d9   : > { %v485_v57 = vmul.f32 %v482_v56, %v445_v31  ;;  %v484_v58 = vmul.f32 %v482_v56, %v443_v55 }
 0x1db   : > { %529 = vmatprep.subr.mxu1 %v485_v57 }
 0x1dc   : > { %530 = vmatpush1.msra.mxu1 %v484_v58  ;;  %v574_v63 = vpop.permute.xlu0 %573 }
 0x1dd   : > { %869 = vmatmul.mubr.msk.f32.vlgmr.msra.gmra.mxu1 %vm495_vm5, %v868_v59  ;;  %890 = vmatprep.subr.bf16.mxu1 %v1230_v3  ;;  %v579_v5 = vrot.slane %v574_v63, %v1426_v42 }
 0x1de   : > { %891 = vmatpush3.bf16.msra.mxu1 %v1031_v13  ;;  %906 = vmatprep.mubr.msk.bf16.mxu1 %vm1235_vm6, %v1230_v3 }
 0x1df   : > { %v580_v9 = vmul.f32 %v579_v5, %v570_v7  ;;  %892 = vmatprep.subr.bf16.mxu1 %v1230_v3 }
 0x1e2   : > { %893 = vmatpush3.bf16.msra.mxu1 %v1032_v14 }
 0x1e3   : > { %894 = vmatprep.subr.bf16.mxu1 %v1230_v3 }
 0x1e6   : > { %895 = vmatpush3.bf16.msra.mxu1 %v1033_v15 }
 0x1e7   : > { %896 = vmatprep.subr.bf16.mxu1 %v1230_v3 }
 0x1ea   : > { %897 = vmatpush3.bf16.msra.mxu1 %v1034_v16 }
 0x1eb   : > { %898 = vmatprep.subr.bf16.mxu1 %v1230_v3 }
 0x1ee   : > { %899 = vmatpush3.bf16.msra.mxu1 %v1035_v17 }
 0x1ef   : > { %900 = vmatprep.subr.bf16.mxu1 %v1230_v3 }
 0x1f2   : > { %901 = vmatpush3.bf16.msra.mxu1 %v1036_v2 }
 0x1f3   : > { %902 = vmatprep.subr.bf16.mxu1 %v1230_v3 }
 0x1f6   : > { %903 = vmatpush3.bf16.msra.mxu1 %v1037_v18 }
 0x1f7   : > { %904 = vmatprep.subr.bf16.mxu1 %v1230_v3 }
 0x1fa   : > { %905 = vmatpush3.bf16.msra.mxu1 %v1038_v21 }
 0x29d   : > { %v565_v0 = vpop.f32.mrf.mxu1 }
 0x29f   : > { %v567_v4 = vpop.f32.mrf.mxu1 }
 0x2a0   : > { %v583_v6 = vcombine.low %v565_v0, %v567_v4 }
 0x2a2   : > { %v590_v8 = vrot.slane %v583_v6, %v589_v1 }
 0x2a4   : > { %v597_v10 = vrot.slane %v590_v8, %v589_v1 }
 0x2a6   : > { %v599_v11 = vadd.f32 %v597_v10, %v580_v9 }
 0x2a8   : > { %604 = vst.msk [vmem:[#allocation3] sm:$0x3] %vm1412_vm0, %v599_v11 }
 0x2af   : > { %v609_v12 = vld [vmem:[#allocation3] sm:$0x3] }
 0x2b0   : > { %611 = vrot.lane.b32.xlu1 %v609_v12, %s1234_s11 }
 0x322   : > { %v612_v19 = vpop.permute.xlu1 %611 }
 0x323   : > { %v613_v20 = vrot.slane %v612_v19, 1 }
 0x325   : > { %1043 = vrcp.f32 %v613_v20 }
 0x332   : > { %v1044_v22 = vpop.eup %1043 }
 0x333   : > { %618 = vperm.xlu1 %1006, %v1044_v22  }
 0x3ae   : > { %v619_v23 = vpop.permute.xlu1 %618 }
 0x3af   : > { %v624_v24 = vrot.slane %v619_v23, %v1426_v42 }
 0x3b1   : > { %v625_v25 = vmul.f32 %v624_v24, %v609_v12 }
 0x3b3   : > { %v626_v26 = vpack.c.bf16 %v625_v25, %v625_v25 }
 0x3b5   : > { %907 = vmatmul.mubr.bf16.vlgmr.msra.gmra.mxu1 %v626_v26 }
 0x475   : > { %v726_v28 = vpop.f32.mrf.mxu1 }
 0x476   : > { %v727_v29 = vadd.f32 %v726_v28, %v643_v27 }
 0x477   : > { %v908_v3 = vpop.f32.mrf.mxu1 }
 0x478   : > { %732 = vst [vmem:[%s287_s8] sm:$0x1] %v727_v29 }
 0x479   : > { %v729_v30 = vpop.f32.mrf.mxu1 }
 0x47a   : > { %1146 = shalt.err (!%p1143_p5)
}
 0x47b   : > { %s1147_s7 = scalar_lea.hbm %s1453_s19, 16  ;;  %s1151_s11 = scalar_lea.hbm %s1507_s6, 32 }
 0x47c   : > { %p1148_p10 = scmp.ne.s32.totalorder %s1453_s19, %s1147_s7  ;;  %p1152_p6 = scmp.lt.s32.totalorder %s1453_s19, %s1507_s6 }
 0x47d   : > { %p1153_p12 = scmp.lt.s32.totalorder %s1151_s11, %s1147_s7 }
 0x47e   : > { %p1149_p1 = pnand %p1148_p10, %p1370_p7 }
 0x47f   : > { %p1154_p3 = por %p1153_p12, %p1152_p6 }
 0x480   : > { %p1150_p4 = pneg %p1149_p1 }
 0x482   : > { %p1155_p8 = pnand %p1154_p3, %p1150_p4 }
 0x484   : > { %1158 = shalt.err (!%p1155_p8)
}
 0x485   : > { %920 = dma.vmem_to_hbm [thread:$0]  (%p1370_p7), %s1455_s12, 16, %s1453_s19, %s734_s16   ;;  %v909_v31 = vpop.f32.mrf.mxu1 }
 0x486 PF: > { %s758_s30 = sand.u32 1, %s1199_s24   ;;  %p1525_p9 = scmp.ne.s32.totalorder %s1515_s10, 0 }
 0x487   : > { %p1526_p11 = scmp.ge.s32.totalorder %s1219_s29, 2  ;;  %s759_s8 = scalar_lea.sflag [#allocation8], %s758_s30 }
 0x489   : > { %p934_p2 = pnand %p1526_p11, %p1525_p9 }
 0x48b   : > { %p935_p13 = pneg %p934_p2 }
 0x48d   : > { %1194 = dma.done.wait (%p935_p13), %s759_s8, 16  }
 0x48e   : > { %1196 = vsyncadd (%p935_p13), %s759_s8, 4294967280  ;;  %s27_s29 = sadd.s32 1, %s1219_s29   ;;  %s1527_s24 = smov %s1203_s25 }
 0x48f   : > { %p24_p0 = scmp.ge.s32.totalorder %s27_s29, 4   ;;  %s1528_s25 = smov %s1207_s26 }
 0x490   : > { %s1529_s26 = smov %s1379_s20  ;;  %s1530_s27 = smov %s1215_s28 }
 0x491   : > { %s1531_s28 = smov %s1533_s13  ;;  %26 = sbr.rel (!%p24_p0) target bundleno = 13 (0xd), region = 101 }
 0x496   :  { %763 = vsyncpa [#allocation7], 1 }
 0x497   :  { %765 = vsyncpa [#allocation7 + $0x1], 1 }
 0x498   :  { %766 = vsyncpa [#allocation10], 1 }
 0x499   :  { %767 = vsyncpa [#allocation8], 1 }
 0x49a   :  { %769 = vsyncpa [#allocation8 + $0x1], 1 }

</bundles_post_ra>
